<compile_context>
chip_gen: v7x
topology: tpu7x:2x2x1
jax: 0.10.0
libtpu: 0.0.40
codegen_flags: <defaults>
</compile_context>

<pallas_src>
import jax
import jax.numpy as jnp
from jax import lax
from jax.experimental import pallas as pl
from jax.experimental.pallas import tpu as pltpu

IN_FEATURES = 28 * 28        # 784
OUT_FEATURES = 16
LANE = 128
PADDED_IN = 896              # 784 rounded up to 128 lanes (actual VMEM layout)

# w:(16,784) . x:(tile_b,784), contract K=784 of both  ->  (16, tile_b)
_CONTRACT_WX = (((1,), (1,)), ((), ()))


def _round_up(x, m):
    return (x + m - 1) // m * m


def _tpu_vmem_capacity():
    try:
        info = pltpu.get_tpu_info()
        return int(getattr(info, "vmem_capacity_bytes", 64 << 20))
    except Exception:
        return 64 << 20      # conservative fallback (v7x-sized) if query fails


def _max_tile_b(vmem_cap):
    # 128 MiB physical VMEM (v5e/v6e) -> 2048-row tiles; 64 MiB (v7x) -> 1024.
    return 2048 if vmem_cap >= (100 << 20) else 1024


def _tile_b(batch, max_tile):
    # Tiny batches: one full block (block == full array dim is always legal).
    if batch <= 2 * LANE:
        return batch
    # Keep the tile a multiple of 128 (batch lives on the output lane axis) and
    # aim for >= 2 grid steps so both v7x TensorCores participate; harmless on
    # single-TC v5e/v6e.  Ragged tail handled by Pallas masking.
    return min(max_tile, _round_up(pl.cdiv(batch, 2), LANE))


def _vmem_limit_bytes(tile_b, n_streams, x_bytes, vmem_cap):
    # Lane-padded accounting, double-buffered (BlockSpec pipelining).
    in_b = n_streams * _round_up(tile_b, 8) * PADDED_IN * x_bytes * 2
    out_b = n_streams * OUT_FEATURES * _round_up(tile_b, LANE) * x_bytes * 2
    w_b = OUT_FEATURES * PADDED_IN * 4 * 2
    b_b = OUT_FEATURES * LANE * 4 * 2
    need = int(1.25 * (in_b + out_b + w_b + b_b)) + (4 << 20)
    ceiling = vmem_cap - (12 << 20)       # headroom for Mosaic internal scratch
    floor = min(32 << 20, ceiling)
    return max(min(need, ceiling), floor)


def _triplet_kernel(x1_ref, x2_ref, x3_ref, w_ref, b_ref,
                    o1_ref, o2_ref, o3_ref):
    # x*_ref: (tile_b, 784)  w_ref: (16, 784)  b_ref: (16, 1)
    # o*_ref: (16, tile_b)  -- batch on the lane axis => unmasked stores.
    w = w_ref[...]
    b = b_ref[...]
    for x_ref, o_ref in ((x1_ref, o1_ref), (x2_ref, o2_ref), (x3_ref, o3_ref)):
        x = x_ref[...]
        if x.dtype != w.dtype:            # bf16 inputs: cast on-VMEM (VPU-side)
            x = x.astype(w.dtype)
        acc = lax.dot_general(w, x, _CONTRACT_WX,
                              preferred_element_type=jnp.float32)
        o_ref[...] = (acc + b).astype(o_ref.dtype)


def _embed_kernel(x_ref, w_ref, b_ref, o_ref):
    w = w_ref[...]
    x = x_ref[...]
    if x.dtype != w.dtype:
        x = x.astype(w.dtype)
    acc = lax.dot_general(w, x, _CONTRACT_WX,
                          preferred_element_type=jnp.float32)
    o_ref[...] = (acc + b_ref[...]).astype(o_ref.dtype)


def _linear_call(xs, weight, bias, kernel):
    """Shared builder: xs is a list of (B, 784) arrays sharing weight/bias.
    Returns a tuple of (B, 16) outputs (one per input stream)."""
    n = len(xs)
    B = xs[0].shape[0]
    x_bytes = jnp.dtype(xs[0].dtype).itemsize

    vmem_cap = _tpu_vmem_capacity()
    tile_b = _tile_b(B, _max_tile_b(vmem_cap))
    grid = (pl.cdiv(B, tile_b),)

    b2 = bias.reshape(OUT_FEATURES, 1)     # broadcasts over the lane (batch) axis

    x_spec = pl.BlockSpec((tile_b, IN_FEATURES), lambda i: (i, 0))
    w_spec = pl.BlockSpec((OUT_FEATURES, IN_FEATURES), lambda i: (0, 0))   # resident
    b_spec = pl.BlockSpec((OUT_FEATURES, 1), lambda i: (0, 0))             # resident
    o_spec = pl.BlockSpec((OUT_FEATURES, tile_b), lambda i: (0, i))        # lane-dense

    out_sds = jax.ShapeDtypeStruct((OUT_FEATURES, B), xs[0].dtype)

    flops = n * 2 * B * IN_FEATURES * OUT_FEATURES
    bytes_accessed = (x_bytes * n * B * (IN_FEATURES + OUT_FEATURES)
                      + 4 * OUT_FEATURES * (IN_FEATURES + 1))

    outs = pl.pallas_call(
        kernel,
        out_shape=tuple(out_sds for _ in range(n)),
        grid_spec=pltpu.PrefetchScalarGridSpec(
            num_scalar_prefetch=0,
            grid=grid,
            in_specs=[x_spec] * n + [w_spec, b_spec],
            out_specs=[o_spec] * n,
        ),
        compiler_params=pltpu.CompilerParams(
            dimension_semantics=("parallel",),
            vmem_limit_bytes=_vmem_limit_bytes(tile_b, n, x_bytes, vmem_cap)),
        cost_estimate=pl.CostEstimate(
            flops=flops, transcendentals=0, bytes_accessed=bytes_accessed),
    )(*xs, weight, b2)

    # Transpose the tiny (16, B) slabs back to PyTorch's (B, 16) layout.
    return tuple(o.T for o in outs)


def triplet_net_forward(x1, x2, x3, weight, bias):
    """x*: (B, C, H, W); weight: (16, 784); bias: (16,).
    Returns (out1, out2, out3), each (B, 16)."""
    B = x1.shape[0]
    xs = [x.reshape(B, -1) for x in (x1, x2, x3)]    # glue reshapes only
    assert all(x.shape == (B, IN_FEATURES) for x in xs)
    o1, o2, o3 = _linear_call(xs, weight, bias, _triplet_kernel)
    return o1, o2, o3


def get_embedding(x, weight, bias):
    """Single-branch embedding: (B, C, H, W) -> (B, 16)."""
    B = x.shape[0]
    x_flat = x.reshape(B, -1)
    assert x_flat.shape == (B, IN_FEATURES)
    (o,) = _linear_call([x_flat], weight, bias, _embed_kernel)
    return o


def init_params(key):
    """Match nn.Linear default init: uniform(-1/sqrt(fan_in), +1/sqrt(fan_in))."""
    kw, kb = jax.random.split(key)
    bound = 1.0 / jnp.sqrt(jnp.float32(IN_FEATURES))
    weight = jax.random.uniform(
        kw, (OUT_FEATURES, IN_FEATURES), jnp.float32, -bound, bound)
    bias = jax.random.uniform(
        kb, (OUT_FEATURES,), jnp.float32, -bound, bound)
    return weight, bias


if __name__ == "__main__":
    key = jax.random.PRNGKey(0)
    k1, k2, k3, kp = jax.random.split(key, 4)

    # MNIST-like triplet inputs: batch=2, channels=1, 28x28 (required by fc dims).
    x1 = jax.random.normal(k1, (2, 1, 28, 28), jnp.float32)
    x2 = jax.random.normal(k2, (2, 1, 28, 28), jnp.float32)
    x3 = jax.random.normal(k3, (2, 1, 28, 28), jnp.float32)
    weight, bias = init_params(kp)

    o1, o2, o3 = jax.block_until_ready(
        triplet_net_forward(x1, x2, x3, weight, bias))

    # Pure-JAX reference (shared-weight linear on flattened inputs).
    def ref_embed(x):
        return x.reshape(x.shape[0], -1) @ weight.T + bias

    ok = True
    for out, x in ((o1, x1), (o2, x2), (o3, x3)):
        ok &= out.shape == (2, OUT_FEATURES)
        ok &= bool(jnp.allclose(out, ref_embed(x), atol=1e-4, rtol=1e-4))

    # get_embedding parity check (TripletNet.get_embedding).
    e1 = jax.block_until_ready(get_embedding(x1, weight, bias))
    ok &= e1.shape == (2, OUT_FEATURES)
    ok &= bool(jnp.allclose(e1, ref_embed(x1), atol=1e-4, rtol=1e-4))

    assert ok
    print("KERNEL_OK")
</pallas_src>

<mosaic_0001>
module attributes {stable_mosaic.version = 11 : i64} {
  func.func @_triplet_kernel(%arg0: i32, %arg1: memref<2x784xf32, #tpu.memory_space<vmem>>, %arg2: memref<2x784xf32, #tpu.memory_space<vmem>>, %arg3: memref<2x784xf32, #tpu.memory_space<vmem>>, %arg4: memref<16x784xf32, #tpu.memory_space<vmem>>, %arg5: memref<16x1xf32, #tpu.memory_space<vmem>>, %arg6: memref<16x2xf32, #tpu.memory_space<vmem>>, %arg7: memref<16x2xf32, #tpu.memory_space<vmem>>, %arg8: memref<16x2xf32, #tpu.memory_space<vmem>>) attributes {dimension_semantics = [#tpu.dimension_semantics<parallel>], iteration_bounds = array<i64: 1>, scalar_prefetch = 0 : i64, scratch_operands = 0 : i64, tpu.core_type = #tpu.core_type<tc>, window_params = [{transform_indices = @transform_0, window_bounds = array<i64: 2, 784>}, {transform_indices = @transform_1, window_bounds = array<i64: 2, 784>}, {transform_indices = @transform_2, window_bounds = array<i64: 2, 784>}, {pipeline_mode = #tpu.pipeline_mode<synchronous>, transform_indices = @transform_3, window_bounds = array<i64: 16, 784>}, {pipeline_mode = #tpu.pipeline_mode<synchronous>, transform_indices = @transform_4, window_bounds = array<i64: 16, 1>}, {transform_indices = @transform_5, window_bounds = array<i64: 16, 2>}, {transform_indices = @transform_6, window_bounds = array<i64: 16, 2>}, {transform_indices = @transform_7, window_bounds = array<i64: 16, 2>}]} {
    %c0 = arith.constant 0 : index
    %c0_0 = arith.constant 0 : index
    %0 = vector.load %arg4[%c0, %c0_0] : memref<16x784xf32, #tpu.memory_space<vmem>>, vector<16x784xf32>
    %c0_1 = arith.constant 0 : index
    %c0_2 = arith.constant 0 : index
    %1 = vector.load %arg5[%c0_1, %c0_2] : memref<16x1xf32, #tpu.memory_space<vmem>>, vector<16x1xf32>
    %c0_3 = arith.constant 0 : index
    %c0_4 = arith.constant 0 : index
    %2 = vector.load %arg1[%c0_3, %c0_4] : memref<2x784xf32, #tpu.memory_space<vmem>>, vector<2x784xf32>
    %cst = arith.constant dense<0.000000e+00> : vector<16x2xf32>
    %3 = tpu.matmul %0, %2, %cst {dimension_numbers = #tpu.dot_dimension_numbers<[1], [1], [0], [0], [0, 0, 1, 0], [], []>} : vector<16x784xf32>, vector<2x784xf32>, vector<16x2xf32> -> vector<16x2xf32>
    %4 = vector.broadcast %1 : vector<16x1xf32> to vector<16x2xf32>
    %5 = arith.addf %3, %4 : vector<16x2xf32>
    %c0_5 = arith.constant 0 : index
    %c0_6 = arith.constant 0 : index
    %6 = vector.load %arg6[%c0_5, %c0_6] : memref<16x2xf32, #tpu.memory_space<vmem>>, vector<16x2xf32>
    tpu.vector_store %arg6[%c0_5, %c0_6], %5 {strides = array<i32>} : memref<16x2xf32, #tpu.memory_space<vmem>>, vector<16x2xf32>,
    %c0_7 = arith.constant 0 : index
    %c0_8 = arith.constant 0 : index
    %7 = vector.load %arg2[%c0_7, %c0_8] : memref<2x784xf32, #tpu.memory_space<vmem>>, vector<2x784xf32>
    %cst_9 = arith.constant dense<0.000000e+00> : vector<16x2xf32>
    %8 = tpu.matmul %0, %7, %cst_9 {dimension_numbers = #tpu.dot_dimension_numbers<[1], [1], [0], [0], [0, 0, 1, 0], [], []>} : vector<16x784xf32>, vector<2x784xf32>, vector<16x2xf32> -> vector<16x2xf32>
    %9 = vector.broadcast %1 : vector<16x1xf32> to vector<16x2xf32>
    %10 = arith.addf %8, %9 : vector<16x2xf32>
    %c0_10 = arith.constant 0 : index
    %c0_11 = arith.constant 0 : index
    %11 = vector.load %arg7[%c0_10, %c0_11] : memref<16x2xf32, #tpu.memory_space<vmem>>, vector<16x2xf32>
    tpu.vector_store %arg7[%c0_10, %c0_11], %10 {strides = array<i32>} : memref<16x2xf32, #tpu.memory_space<vmem>>, vector<16x2xf32>,
    %c0_12 = arith.constant 0 : index
    %c0_13 = arith.constant 0 : index
    %12 = vector.load %arg3[%c0_12, %c0_13] : memref<2x784xf32, #tpu.memory_space<vmem>>, vector<2x784xf32>
    %cst_14 = arith.constant dense<0.000000e+00> : vector<16x2xf32>
    %13 = tpu.matmul %0, %12, %cst_14 {dimension_numbers = #tpu.dot_dimension_numbers<[1], [1], [0], [0], [0, 0, 1, 0], [], []>} : vector<16x784xf32>, vector<2x784xf32>, vector<16x2xf32> -> vector<16x2xf32>
    %14 = vector.broadcast %1 : vector<16x1xf32> to vector<16x2xf32>
    %15 = arith.addf %13, %14 : vector<16x2xf32>
    %c0_15 = arith.constant 0 : index
    %c0_16 = arith.constant 0 : index
    %16 = vector.load %arg8[%c0_15, %c0_16] : memref<16x2xf32, #tpu.memory_space<vmem>>, vector<16x2xf32>
    tpu.vector_store %arg8[%c0_15, %c0_16], %15 {strides = array<i32>} : memref<16x2xf32, #tpu.memory_space<vmem>>, vector<16x2xf32>,
    return
  }
  func.func @transform_0(%arg0: i32) -> (i32, i32) {
    %c0_i32 = arith.constant 0 : i32
    %c0_i32_0 = arith.constant 0 : i32
    return %arg0, %c0_i32 : i32, i32
  }
  func.func @transform_1(%arg0: i32) -> (i32, i32) {
    %c0_i32 = arith.constant 0 : i32
    %c0_i32_0 = arith.constant 0 : i32
    return %arg0, %c0_i32 : i32, i32
  }
  func.func @transform_2(%arg0: i32) -> (i32, i32) {
    %c0_i32 = arith.constant 0 : i32
    %c0_i32_0 = arith.constant 0 : i32
    return %arg0, %c0_i32 : i32, i32
  }
  func.func @transform_3(%arg0: i32) -> (i32, i32) {
    %c0_i32 = arith.constant 0 : i32
    %c0_i32_0 = arith.constant 0 : i32
    %c0_i32_1 = arith.constant 0 : i32
    return %c0_i32, %c0_i32_0 : i32, i32
  }
  func.func @transform_4(%arg0: i32) -> (i32, i32) {
    %c0_i32 = arith.constant 0 : i32
    %c0_i32_0 = arith.constant 0 : i32
    %c0_i32_1 = arith.constant 0 : i32
    return %c0_i32, %c0_i32_0 : i32, i32
  }
  func.func @transform_5(%arg0: i32) -> (i32, i32) {
    %c0_i32 = arith.constant 0 : i32
    %c0_i32_0 = arith.constant 0 : i32
    return %c0_i32, %arg0 : i32, i32
  }
  func.func @transform_6(%arg0: i32) -> (i32, i32) {
    %c0_i32 = arith.constant 0 : i32
    %c0_i32_0 = arith.constant 0 : i32
    return %c0_i32, %arg0 : i32, i32
  }
  func.func @transform_7(%arg0: i32) -> (i32, i32) {
    %c0_i32 = arith.constant 0 : i32
    %c0_i32_0 = arith.constant 0 : i32
    return %c0_i32, %arg0 : i32, i32
  }
}

</mosaic_0001>

<bundles_post_ra>
// kernel: tpu_custom_call.1
= control target key start
LH: loop header
LB: loop body
LE: loop exit
PB: predicated region body
PF: predicated region fallthrough
CT: control target
= control target key end

     0   :  { %13 = vsyncpa [#allocation3], 0  ;;  %s1494_s0 = inlined_call_operand.vmem [shape: f32[2,784], index: 0, kind: input, shape index: {}]   ;;  %s1495_s1 = inlined_call_operand.hbm [shape: f32[2,784], index: 1, kind: input, shape index: {}]   ;;  %s1496_s2 = inlined_call_operand.hbm [shape: f32[2,784], index: 2, kind: input, shape index: {}]   ;;  %s1497_s3 = inlined_call_operand.hbm [shape: f32[16,784], index: 3, kind: input, shape index: {}]   ;;  %s1498_s4 = inlined_call_operand.vmem [shape: f32[16,1], index: 4, kind: input, shape index: {}]   ;;  %s1499_s5 = inlined_call_operand.vmem [shape: f32[16,2], index: 5, kind: output, shape index: {0}]   ;;  %s1500_s6 = inlined_call_operand.vmem [shape: f32[16,2], index: 6, kind: output, shape index: {1}]   ;;  %s1501_s7 = inlined_call_operand.vmem [shape: f32[16,2], index: 7, kind: output, shape index: {2}]  }
   0x1   :  { %14 = vsyncpa [#allocation5], 0  ;;  %s1294_s24 = smov [#allocation4]   ;;  %s1295_s26 = smov [#allocation2]  }
   0x2   :  { %s33_s25 = sshll.u32 %s1294_s24, 4  ;;  %s23_s27 = sshll.u32 %s1295_s26, 4  ;;  %s34_s25 = int_to_ptr.vmem [resolvable:$true] %s33_s25  ;;  %s24_s27 = int_to_ptr.vmem [resolvable:$true] %s23_s27 }
   0x3   :  { %s1224_s30 = scalar_lea.hbm %s1496_s2, 224 }
   0x4   :  { %p1225_p0 = scmp.ne.s32.totalorder %s1496_s2, %s1224_s30  ;;  %p1228_p1 = scmp.lt.u32.totalorder %s1224_s30, %s1496_s2 }
   0x6   :  { %p1230_p2 = pnand %p1228_p1, %p1225_p0 }
   0x8   :  { %1233 = shalt.err (!%p1230_p2)
}
   0x9   :  { %s1234_s12 = scalar_lea.vmem %s34_s25, 224  ;;  %p1239_p4 = scmp.lt.s32.totalorder %s34_s25, %s34_s25 }
   0xa   :  { %p1235_p3 = scmp.ne.s32.totalorder %s34_s25, %s1234_s12  ;;  %p1240_p5 = scmp.lt.s32.totalorder %s1234_s12, %s1234_s12 }
   0xc   :  { %p1241_p6 = por %p1240_p5, %p1239_p4 }
   0xe   :  { %p1242_p7 = pnand %p1241_p6, %p1235_p3 }
  0x10   :  { %1245 = shalt.err (!%p1242_p7)
}
  0x11   :  { %36 = dma.hbm_to_vmem [thread:$0]  %s1496_s2, 224, %s34_s25, [#allocation5]  }
  0x12   :  { %s1246_s17 = scalar_lea.hbm %s1495_s1, 224 }
  0x13   :  { %p1247_p8 = scmp.ne.s32.totalorder %s1495_s1, %s1246_s17  ;;  %p1250_p9 = scmp.lt.u32.totalorder %s1246_s17, %s1495_s1 }
  0x15   :  { %p1252_p10 = pnand %p1250_p9, %p1247_p8 }
  0x17   :  { %1255 = shalt.err (!%p1252_p10)
}
  0x18   :  { %s1256_s22 = scalar_lea.vmem %s24_s27, 224  ;;  %p1261_p12 = scmp.lt.s32.totalorder %s24_s27, %s24_s27 }
  0x19   :  { %p1257_p11 = scmp.ne.s32.totalorder %s24_s27, %s1256_s22  ;;  %p1262_p13 = scmp.lt.s32.totalorder %s1256_s22, %s1256_s22 }
  0x1b   :  { %p1263_p0 = por %p1262_p13, %p1261_p12 }
  0x1d   :  { %p1264_p1 = pnand %p1263_p0, %p1257_p11 }
  0x1f   :  { %1267 = shalt.err (!%p1264_p1)
}
  0x20   :  { %26 = dma.hbm_to_vmem [thread:$0]  %s1495_s1, 224, %s24_s27, [#allocation3]  }
  0x21   :  { %s1296_s24 = smov [#allocation6]   ;;  %s1268_s29 = scalar_lea.hbm %s1497_s3, 1792 }
  0x22   :  { %s42_s25 = sshll.u32 %s1296_s24, 4  ;;  %p1269_p2 = scmp.ne.s32.totalorder %s1497_s3, %s1268_s29  ;;  %s43_s25 = int_to_ptr.vmem [resolvable:$true] %s42_s25 }
  0x23   :  { %p1272_p3 = scmp.lt.u32.totalorder %s1268_s29, %s1497_s3 }
  0x25   :  { %p1274_p4 = pnand %p1272_p3, %p1269_p2 }
  0x27   :  { %1277 = shalt.err (!%p1274_p4)
}
  0x28   :  { %s1278_s11 = scalar_lea.vmem %s43_s25, 1792  ;;  %p1283_p6 = scmp.lt.s32.totalorder %s43_s25, %s43_s25 }
  0x29   :  { %p1279_p5 = scmp.ne.s32.totalorder %s43_s25, %s1278_s11  ;;  %p1284_p7 = scmp.lt.s32.totalorder %s1278_s11, %s1278_s11 }
  0x2b   :  { %p1285_p8 = por %p1284_p7, %p1283_p6 }
  0x2d   :  { %p1286_p9 = pnand %p1285_p8, %p1279_p5 }
  0x2f   :  { %1289 = shalt.err (!%p1286_p9)
}
  0x30   :  { %s1297_s1 = smov 896   ;;  %s1298_s27 = smov 56  }
  0x31   :  { %48 = dma.hbm_to_vmem [thread:$0]  %s1497_s3, 1792, %s43_s25, [#allocation5], %s1297_s1, %s1297_s1, %s1298_s27  }
  0x32   :  { %1290 = dma.done.wait [#allocation3], 224  }
  0x33   :  { %1291 = vsyncadd [#allocation3], 4294967072 }
  0x34   :  { %1292 = dma.done.wait [#allocation5], 2016  }
  0x35   :  { %1293 = vsyncadd [#allocation5], 4294965280  ;;  %v94_v0 = vlaneseq  ;;  %v1299_v1 = vmov 1983009808   ;;  %v1300_v3 = vmov 0   ;;  %v76_v7 = vld [vmem:[%s1494_s0] sm:$0xff] }
  0x36   :  { %v92_v2 = vunpack.c.l.s4 %v1299_v1  ;;  %1217 = vset.pattern.permute.xlu0 %v1300_v3  ;;  %v1382_v8 = vld [vmem:[#allocation6 + $0x8] sm:$0xff]  ;;  %v90_v10 = vcombine.high %v76_v7, %v76_v7  ;;  %v1386_v11 = vld [vmem:[#allocation6 + $0x18] sm:$0xff]  ;;  %vm129_vm0 = vcmask 130048   ;;  %v1396_v23 = vld [vmem:[#allocation6] sm:$0xff]  ;;  %vm438_vm1 = vcmask 15360  }
  0x37   :  { %v95_v4 = vshrl.u32 %v94_v0, 7  ;;  %202 = vmatprep.mubr.f32.mxu1 %v1382_v8  ;;  %v77_v12 = vld [vmem:[%s1494_s0 + $0x8] sm:$0x3f]  ;;  %277 = vmatprep.mubr.f32.mxu0 %v1386_v11  ;;  %v441_v18 = vld [vmem:[#allocation2] sm:$0xff]  ;;  %v1408_v31 = vld [vmem:[#allocation6 + $0x38] sm:$0xff] }
  0x38   :  { %v93_v5 = vunpack.c.0.s8 %v92_v2  ;;  %v107_v13 = vcombine.high %v77_v12, %v77_v12  ;;  %v442_v22 = vld [vmem:[#allocation2 + $0x8] sm:$0x3f]  ;;  %v1398_v25 = vld [vmem:[#allocation6 + $0x40] sm:$0xff]  ;;  %v445_v27 = vcombine.high %v441_v18, %v441_v18  ;;  %v788_v32 = vld [vmem:[#allocation4] sm:$0xff] }
  0x39   :  { %v462_v24 = vcombine.high %v442_v22, %v442_v22  ;;  %v1401_v28 = vld [vmem:[#allocation6 + $0x10] sm:$0xff]  ;;  %v74_v35 = vld [vmem:[%s1498_s4] sm:$0xff]  ;;  %v792_v45 = vcombine.high %v788_v32, %v788_v32  ;;  %v71_v47 = vld [vmem:[#allocation6 + $0x58] sm:$0xff] }
  0x3a   :  { %v1377_v6 = vsub.s32 %v93_v5, %v95_v4  ;;  %v1404_v29 = vld [vmem:[#allocation6 + $0x50] sm:$0xff]  ;;  %v1419_v36 = vld [vmem:[#allocation6 + $0x48] sm:$0xff]  ;;  %80 = vperm.xlu0 %1217, %v74_v35   ;;  %v64_v42 = vld [vmem:[#allocation6 + $0x20] sm:$0xff] }
  0x3b   :  { %v1412_v33 = vld [vmem:[#allocation6 + $0x30] sm:$0xff]  ;;  %v1422_v37 = vld [vmem:[#allocation6 + $0x28] sm:$0xff]  ;;  %v72_v43 = vld [vmem:[#allocation6 + $0x60] sm:$0xff] }
  0x3c   :  { %v97_v9 = vrot.slane %v76_v7, %v1377_v6  ;;  %v114_v14 = vrot.slane %v77_v12, %v1377_v6  ;;  %v104_v16 = vrot.slane %v90_v10, %v1377_v6  ;;  %v121_v17 = vrot.slane %v107_v13, %v1377_v6  ;;  %v1428_v39 = vld [vmem:[#allocation6 + $0x68] sm:$0xff]  ;;  %v789_v48 = vld [vmem:[#allocation4 + $0x8] sm:$0x3f] }
  0x3d   :  { %v452_v21 = vrot.slane %v441_v18, %v1377_v6  ;;  %v476_v30 = vrot.slane %v462_v24, %v1377_v6  ;;  %v459_v34 = vrot.slane %v445_v27, %v1377_v6  ;;  %v799_v38 = vrot.slane %v788_v32, %v1377_v6  ;;  %v75_v50 = vld [vmem:[%s1498_s4 + $0x8] sm:$0xff] }
  0x3e   :  { %v105_v15 = vcombine.high %v97_v9, %v97_v9  ;;  %v106_v19 = vcombine.high %v104_v16, %v104_v16  ;;  %v122_v20 = vcombine.high %v114_v14, %v114_v14  ;;  %v469_v41 = vrot.slane %v442_v22, %v1377_v6  ;;  %85 = vperm.xlu0 %1217, %v75_v50  }
  0x3f   :  { %v460_v26 = vcombine.high %v452_v21, %v452_v21  ;;  %v461_v40 = vcombine.high %v459_v34, %v459_v34  ;;  %v807_v44 = vcombine.high %v799_v38, %v799_v38  ;;  %v806_v49 = vrot.slane %v792_v45, %v1377_v6 }
  0x40   :  { %138 = vmatprep.subr.mxu1 %v105_v15  ;;  %213 = vmatprep.subr.mxu0 %v106_v19  ;;  %v477_v46 = vcombine.high %v469_v41, %v469_v41  ;;  %v809_v51 = vcombine.high %v789_v48, %v789_v48  ;;  %v816_v53 = vrot.slane %v789_v48, %v1377_v6 }
  0x41   :  { %139 = vmatpush1.xpose.msra.mxu1 %v97_v9  ;;  %214 = vmatpush1.xpose.msra.mxu0 %v104_v16  ;;  %v808_v52 = vcombine.high %v806_v49, %v806_v49 }
  0x42   :  { %1167 = vmatprep.subr.msk.mxu1 %vm129_vm0, %v121_v17  ;;  %288 = vmatprep.subr.mxu0 %v122_v20  ;;  %v823_v54 = vrot.slane %v809_v51, %v1377_v6  ;;  %v824_v55 = vcombine.high %v816_v53, %v816_v53 }
  0x44   :  { %203 = vmatmul.mubr.f32.vlgmr.msra.gmra.mrb[0].mxu1 %v1396_v23  ;;  %278 = vmatmul.mubr.f32.vlgmr.msra.gmra.mrb[0].mxu0 %v1401_v28 }
  0x45   :  { %207 = vmatprep.mubr.f32.mxu1 %v1398_v25  ;;  %1168 = vmatpush3.xpose.msk.msra.mxu1 %vm129_vm0, %v121_v17 }
  0x46   :  { %486 = vmatprep.subr.mxu1 %v460_v26  ;;  %289 = vmatpush1.xpose.msra.mxu0 %v114_v14 }
  0x47   :  { %282 = vmatprep.mubr.f32.mxu0 %v1404_v29  ;;  %1172 = vmatprep.subr.msk.mxu0 %vm129_vm0, %v476_v30 }
  0x48   :  { %208 = vmatmul.mubr.f32.gmra.mrb[2].mxu1 %v1408_v31  ;;  %283 = vmatmul.mubr.f32.gmra.mrb[2].mxu0 %v1419_v36 }
  0x49   :  { %1169 = vmatprep.mubr.msk.f32.mxu1 %vm129_vm0, %v1412_v33  ;;  %352 = vmatprep.mubr.f32.mxu0 %v1422_v37 }
  0x4c   :  { %1170 = vmatmul.mubr.msk.f32.vlgmr.msra.gmra.mrb[4].mxu1 %vm129_vm0, %v1428_v39  ;;  %353 = vmatmul.mubr.f32.vlgmr.msra.gmra.mrb[0].mxu0 %v64_v42 }
  0x4d   :  { %487 = vmatpush1.xpose.msra.mxu1 %v452_v21  ;;  %550 = vmatprep.mubr.f32.mxu1 %v1382_v8 }
  0x4e   :  { %561 = vmatprep.subr.mxu1 %v461_v40  ;;  %1173 = vmatpush3.xpose.msk.msra.mxu0 %vm129_vm0, %v476_v30 }
  0x4f   :  { %357 = vmatprep.mubr.f32.mxu0 %v72_v43  ;;  %833 = vmatprep.subr.mxu0 %v807_v44 }
  0x50   :  { %551 = vmatmul.mubr.f32.vlgmr.msra.gmra.mrb[6].mxu1 %v1396_v23  ;;  %358 = vmatmul.mubr.f32.gmra.mrb[2].mxu0 %v71_v47 }
  0x51   :  { %555 = vmatprep.mubr.f32.mxu1 %v1398_v25  ;;  %562 = vmatpush1.xpose.msra.mxu1 %v459_v34 }
  0x52   :  { %636 = vmatprep.subr.mxu1 %v477_v46  ;;  %1174 = vmatprep.mubr.msk.f32.mxu0 %vm129_vm0, %v1412_v33 }
  0x54   :  { %556 = vmatmul.mubr.f32.gmra.mrb[8].mxu1 %v1408_v31  ;;  %1175 = vmatmul.mubr.msk.f32.vlgmr.msra.gmra.mrb[4].mxu0 %vm129_vm0, %v1428_v39 }
  0x55   :  { %625 = vmatprep.mubr.f32.mxu1 %v1386_v11  ;;  %834 = vmatpush1.xpose.msra.mxu0 %v799_v38 }
  0x56   :  { %897 = vmatprep.mubr.f32.mxu0 %v1382_v8  ;;  %908 = vmatprep.subr.mxu0 %v808_v52 }
  0x58   :  { %626 = vmatmul.mubr.f32.vlgmr.msra.gmra.mrb[6].mxu1 %v1401_v28  ;;  %898 = vmatmul.mubr.f32.vlgmr.msra.gmra.mrb[6].mxu0 %v1396_v23 }
  0x59   :  { %630 = vmatprep.mubr.f32.mxu1 %v1404_v29  ;;  %637 = vmatpush1.xpose.msra.mxu1 %v469_v41 }
  0x5a   :  { %1177 = vmatprep.subr.msk.mxu1 %vm129_vm0, %v823_v54  ;;  %909 = vmatpush1.xpose.msra.mxu0 %v806_v49 }
  0x5b   :  { %902 = vmatprep.mubr.f32.mxu0 %v1398_v25  ;;  %983 = vmatprep.subr.mxu0 %v824_v55 }
  0x5c   :  { %631 = vmatmul.mubr.f32.gmra.mrb[8].mxu1 %v1419_v36  ;;  %903 = vmatmul.mubr.f32.gmra.mrb[8].mxu0 %v1408_v31 }
  0x5d   :  { %700 = vmatprep.mubr.f32.mxu1 %v1422_v37  ;;  %972 = vmatprep.mubr.f32.mxu0 %v1386_v11 }
  0x60   :  { %701 = vmatmul.mubr.f32.vlgmr.msra.gmra.mrb[6].mxu1 %v64_v42  ;;  %973 = vmatmul.mubr.f32.vlgmr.msra.gmra.mrb[6].mxu0 %v1401_v28 }
  0x61   :  { %705 = vmatprep.mubr.f32.mxu1 %v72_v43  ;;  %1178 = vmatpush3.xpose.msk.msra.mxu1 %vm129_vm0, %v823_v54 }
  0x62   :  { %984 = vmatpush1.xpose.msra.mxu0 %v816_v53  ;;  %977 = vmatprep.mubr.f32.mxu0 %v1404_v29 }
  0x64   :  { %706 = vmatmul.mubr.f32.gmra.mrb[8].mxu1 %v71_v47  ;;  %978 = vmatmul.mubr.f32.gmra.mrb[8].mxu0 %v1419_v36 }
  0x65   :  { %1179 = vmatprep.mubr.msk.f32.mxu1 %vm129_vm0, %v1412_v33  ;;  %1047 = vmatprep.mubr.f32.mxu0 %v1422_v37 }
  0x68   :  { %1180 = vmatmul.mubr.msk.f32.vlgmr.msra.gmra.mrb[10].mxu1 %vm129_vm0, %v1428_v39  ;;  %1048 = vmatmul.mubr.f32.vlgmr.msra.gmra.mrb[6].mxu0 %v64_v42 }
  0x69   :  { %1052 = vmatprep.mubr.f32.mxu0 %v72_v43 }
  0x6c   :  { %1053 = vmatmul.mubr.f32.gmra.mrb[8].mxu0 %v71_v47 }
  0xb9   :  { %v81_v58 = vpop.permute.xlu0 %80 }
  0xbd   :  { %v86_v63 = vpop.permute.xlu0 %85 }
 0x117   :  { %v204_v56 = vpop.f32.mrb[0].mxu1 }
 0x118   :  { %v206_v57 = vpop.f32.mrb[1].mxu1  ;;  %v205_v61 = vadd.f32 %v204_v56, %v81_v58 }
 0x11b   :  { %v209_v59 = vpop.f32.mrb[2].mxu1 }
 0x11c   :  { %v211_v60 = vpop.f32.mrb[3].mxu1  ;;  %v210_v4 = vadd.f32 %v209_v59, %v86_v63 }
 0x11f   :  { %v1171_v62 = vpop.f32.mrb[4].mxu1  ;;  %v354_v1 = vpop.f32.mrb[0].mxu0 }
 0x120   :  { %v429_v0 = vpop.f32.mrb[5].mxu1  ;;  %v1183_v2 = vadd.f32 %v354_v1, %v205_v61  ;;  %v356_v3 = vpop.f32.mrb[1].mxu0 }
 0x122   :  { %v430_v5 = vadd.f32 %v1183_v2, %v429_v0 }
 0x123   :  { %v359_v6 = vpop.f32.mrb[2].mxu0 }
 0x124   :  { %439 = vst.msk [vmem:[%s1499_s5] sm:$0xff] %vm438_vm1, %v430_v5  ;;  %v1185_v7 = vadd.f32 %v359_v6, %v210_v4  ;;  %v361_v8 = vpop.f32.mrb[3].mxu0 }
 0x126   :  { %v435_v9 = vadd.f32 %v1185_v7, %v1171_v62 }
 0x127   :  { %v1176_v10 = vpop.f32.mrb[4].mxu0 }
 0x128   :  { %440 = vst.msk [vmem:[%s1499_s5 + $0x8] sm:$0xff] %vm438_vm1, %v435_v9  ;;  %v777_v11 = vpop.f32.mrb[5].mxu0 }
 0x133   :  { %v702_v12 = vpop.f32.mrb[6].mxu1 }
 0x134   :  { %v1186_v13 = vadd.f32 %v702_v12, %v81_v58  ;;  %v704_v14 = vpop.f32.mrb[7].mxu1 }
 0x136   :  { %v778_v15 = vadd.f32 %v1186_v13, %v777_v11 }
 0x137   :  { %v707_v16 = vpop.f32.mrb[8].mxu1 }
 0x138   :  { %786 = vst.msk [vmem:[%s1500_s6] sm:$0xff] %vm438_vm1, %v778_v15  ;;  %v1187_v17 = vadd.f32 %v707_v16, %v86_v63  ;;  %v709_v18 = vpop.f32.mrb[9].mxu1 }
 0x13a   :  { %v783_v19 = vadd.f32 %v1187_v17, %v1176_v10 }
 0x13b   :  { %v1181_v20 = vpop.f32.mrb[10].mxu1  ;;  %v1049_v22 = vpop.f32.mrb[6].mxu0 }
 0x13c   :  { %787 = vst.msk [vmem:[%s1500_s6 + $0x8] sm:$0xff] %vm438_vm1, %v783_v19  ;;  %v1124_v21 = vpop.f32.mrb[11].mxu1  ;;  %v1188_v23 = vadd.f32 %v1049_v22, %v81_v58  ;;  %v1051_v24 = vpop.f32.mrb[7].mxu0 }
 0x13e   :  { %v1125_v25 = vadd.f32 %v1188_v23, %v1124_v21 }
 0x13f   :  { %v1054_v26 = vpop.f32.mrb[8].mxu0 }
 0x140   :  { %1133 = vst.msk [vmem:[%s1501_s7] sm:$0xff] %vm438_vm1, %v1125_v25  ;;  %v1189_v27 = vadd.f32 %v1054_v26, %v86_v63  ;;  %v1056_v28 = vpop.f32.mrb[9].mxu0 }
 0x142   :  { %v1130_v29 = vadd.f32 %v1189_v27, %v1181_v20 }
 0x144   :  { %1134 = vst.msk [vmem:[%s1501_s7 + $0x8] sm:$0xff] %vm438_vm1, %v1130_v29 }
 0x145   :  { %1147 = vsyncpa [#allocation3], 1 }
 0x146   :  { %1148 = vsyncpa [#allocation5], 1 }

</bundles_post_ra>
